<compile_context>
chip_gen: v5e
topology: v5e:2x2
jax: 0.10.0
libtpu: 0.0.40
codegen_flags: <defaults>
</compile_context>

<pallas_src>
import functools

import jax
import jax.numpy as jnp
from jax.experimental import pallas as pl
from jax.experimental.pallas import tpu as pltpu


# ------------------------------ Pallas kernel --------------------------------


def _star_relu_kernel(x_ref, w1_ref, b1_ref, w2_ref, b2_ref, o_ref,
                      *, use_mxu, gemm_dtype):
    """Fused star_relu on one (channels, pixel-tile) slab.

    x_ref  : (1, C, TP) f32   channels-first pixel tile of the input
    w1_ref : (4C, C)          linear1.weight, torch (out, in) layout
    b1_ref : (4C, 1)  f32
    w2_ref : (C, 2C)          1e-4 * linear2.weight (scale pre-folded)
    b2_ref : (C, 1)   f32
    o_ref  : (1, C, TP) f32
    """
    x = x_ref[0]                                    # (C, TP) f32
    w1 = w1_ref[...]
    w2 = w2_ref[...]
    b1 = b1_ref[...]
    b2 = b2_ref[...]

    # linear1 (channels-first):  h = W1 @ x + b1             -> (4C, TP) f32
    if use_mxu:
        h = jnp.dot(w1, x.astype(gemm_dtype),
                    preferred_element_type=jnp.float32) + b1
    else:
        # Tiny contraction dim: unrolled VPU broadcast MACs instead of a
        # near-empty MXU pass.
        c_in = x.shape[0]
        h = b1 + sum(w1[:, c:c + 1] * x[c:c + 1, :] for c in range(c_in))

    # reshape(B,H,W,2,2C).unbind(3): x1 = first 2C channels, x2 = last 2C.
    half = h.shape[0] // 2
    g = h[:half] * h[half:]                         # (2C, TP) f32; 1e-4 in w2

    # linear2:  out = (1e-4 * W2) @ g + b2                    -> (C, TP) f32
    if use_mxu:
        out = jnp.dot(w2, g.astype(gemm_dtype),
                      preferred_element_type=jnp.float32) + b2
    else:
        c_mid = g.shape[0]
        out = b2 + sum(w2[:, c:c + 1] * g[c:c + 1, :] for c in range(c_mid))

    o_ref[0] = out.astype(o_ref.dtype)


# --------------------------------- wrapper ------------------------------------


def _pick_tile_p(p_pad, c):
    """Largest lane-dense pixel tile whose per-step VMEM footprint fits a
    conservative budget, preferring >=2 pixel tiles (megacore / pipelining)."""
    # Per pixel per step: in+out tiles double-buffered (2+2)*C*4B, plus the f32
    # h (4C) / g (2C) temporaries and small bf16 copies  ->  ~48*C bytes.
    per_px_bytes = 48 * c
    budget = 12 * (1 << 20)        # safe vs v5e 16 MiB scoped / v7x 64 MiB VMEM
    cands = [t for t in (2048, 1024, 512, 256, 128)
             if t <= p_pad and p_pad % t == 0]
    if not cands:
        return p_pad
    fits = [t for t in cands if t * per_px_bytes <= budget] or [cands[-1]]
    multi = [t for t in fits if p_pad // t >= 2]
    return multi[0] if multi else fits[0]


def star_relu_forward(x_nchw, w1, b1, w2, b2, *, mxu_min_channels=32,
                      gemm_dtype=jnp.bfloat16):
    """Forward pass of the PyTorch `star_relu` module.

    x_nchw: (B, C, H, W) f32; w1: (4C, C); b1: (4C,); w2: (C, 2C); b2: (C,).
    Returns (B, C, H, W) f32.
    """
    B, C, H, W = x_nchw.shape
    assert w1.shape == (4 * C, C) and b1.shape == (4 * C,)
    assert w2.shape == (C, 2 * C) and b2.shape == (C,)

    P = H * W
    P_pad = 128 * pl.cdiv(P, 128)                 # lane axis multiple of 128

    x_flat = x_nchw.astype(jnp.float32).reshape(B, C, P)   # NCHW -> free reshape
    if P_pad != P:
        # Zero-pad so every load/store stays unmasked & lane-dense; padded
        # pixels (nonzero via the biases) are sliced off below, never reduced.
        x_flat = jnp.pad(x_flat, ((0, 0), (0, 0), (0, P_pad - P)))

    use_mxu = C >= mxu_min_channels
    w_dtype = gemm_dtype if use_mxu else jnp.float32

    # Fold the 1e-4 gate scale into linear2's weight (f32, before any cast).
    w1_k = w1.astype(jnp.float32).astype(w_dtype)
    w2_k = (jnp.float32(1e-4) * w2.astype(jnp.float32)).astype(w_dtype)
    b1_k = b1.reshape(-1, 1).astype(jnp.float32)
    b2_k = b2.reshape(-1, 1).astype(jnp.float32)

    tile_p = _pick_tile_p(P_pad, C)
    grid = (B, P_pad // tile_p)

    w_itemsize = jnp.dtype(w_dtype).itemsize
    weight_bytes = ((w1_k.size + w2_k.size) * w_itemsize
                    + (b1_k.size + b2_k.size) * 4)
    tile_bytes = 48 * C * tile_p
    vmem_limit = int(min(max(2 * (tile_bytes + weight_bytes) + (4 << 20),
                             32 << 20), 48 << 20))

    # Constant-index weight blocks never change across the grid; when they are
    # big (large C) drop them to single buffering so the duplicate buffer does
    # not eat VMEM (matters most on v7x's 64 MiB).
    w_spec_kwargs = {}
    if weight_bytes >= (1 << 20):
        w_spec_kwargs = dict(pipeline_mode=pl.Buffered(1))

    const_map = lambda b, p: (0, 0)
    kernel = functools.partial(_star_relu_kernel, use_mxu=use_mxu,
                               gemm_dtype=gemm_dtype)

    out_flat = pl.pallas_call(
        kernel,
        out_shape=jax.ShapeDtypeStruct((B, C, P_pad), jnp.float32),
        grid=grid,
        in_specs=[
            pl.BlockSpec((1, C, tile_p), lambda b, p: (b, 0, p)),
            pl.BlockSpec(w1_k.shape, const_map, **w_spec_kwargs),
            pl.BlockSpec(b1_k.shape, const_map, **w_spec_kwargs),
            pl.BlockSpec(w2_k.shape, const_map, **w_spec_kwargs),
            pl.BlockSpec(b2_k.shape, const_map, **w_spec_kwargs),
        ],
        out_specs=pl.BlockSpec((1, C, tile_p), lambda b, p: (b, 0, p)),
        compiler_params=pltpu.CompilerParams(
            dimension_semantics=("parallel", "parallel"),
            vmem_limit_bytes=vmem_limit),
        cost_estimate=pl.CostEstimate(
            flops=12 * C * C * B * P_pad,
            transcendentals=0,
            bytes_accessed=2 * B * C * P_pad * 4 + weight_bytes),
    )(x_flat, w1_k, b1_k, w2_k, b2_k)

    if P_pad != P:
        out_flat = out_flat[:, :, :P]
    return out_flat.reshape(B, C, H, W)


# ----------------------------- pure-JAX references ----------------------------


def reference_forward(x_nchw, w1, b1, w2, b2):
    """Exact PyTorch-module semantics (f32)."""
    x = jnp.transpose(x_nchw, (0, 2, 3, 1))              # (B, H, W, C)
    h = x @ w1.T + b1                                     # (B, H, W, 4C)
    half = h.shape[-1] // 2
    g = 0.0001 * h[..., :half] * h[..., half:]            # (B, H, W, 2C)
    out = g @ w2.T + b2                                    # (B, H, W, C)
    return jnp.transpose(out, (0, 3, 1, 2))


def reference_forward_bf16_matched(x_nchw, w1, b1, w2, b2,
                                   gemm_dtype=jnp.bfloat16):
    """Same math with GEMM operands rounded to `gemm_dtype`, mirroring the
    kernel's MXU path (so the bf16 test tolerance only covers kernel plumbing,
    not the intentional bf16 rounding)."""
    q = lambda a: a.astype(gemm_dtype).astype(jnp.float32)
    x = jnp.transpose(x_nchw, (0, 2, 3, 1))
    h = q(x) @ q(w1).T + b1
    half = h.shape[-1] // 2
    g = h[..., :half] * h[..., half:]
    out = q(g) @ q(jnp.float32(1e-4) * w2).T + b2
    return jnp.transpose(out, (0, 3, 1, 2))


# ----------------------------------- main -------------------------------------


if __name__ == "__main__":
    keys = jax.random.split(jax.random.PRNGKey(0), 10)

    # ---- primary demo: small shapes implied by the module (f32 / VPU path) ----
    B, C, H, W = 2, 4, 16, 16
    w1 = 0.2 * jax.random.normal(keys[0], (4 * C, C), jnp.float32)  # linear1.weight
    b1 = 0.1 * jax.random.normal(keys[1], (4 * C,), jnp.float32)    # linear1.bias
    w2 = 0.2 * jax.random.normal(keys[2], (C, 2 * C), jnp.float32)  # linear2.weight
    b2 = 0.1 * jax.random.normal(keys[3], (C,), jnp.float32)        # linear2.bias
    x = jax.random.normal(keys[4], (B, C, H, W), jnp.float32)

    out = jax.block_until_ready(star_relu_forward(x, w1, b1, w2, b2))
    ref = reference_forward(x, w1, b1, w2, b2)
    assert out.shape == ref.shape == (B, C, H, W)
    err = float(jnp.max(jnp.abs(out - ref)))
    assert jnp.allclose(out, ref, atol=1e-4, rtol=1e-3), f"small-C path err={err}"

    # ---- secondary check: MXU / bf16 path at a larger channel count -----------
    C2 = 64
    w1b = 0.2 * jax.random.normal(keys[5], (4 * C2, C2), jnp.float32)
    b1b = 0.1 * jax.random.normal(keys[6], (4 * C2,), jnp.float32)
    w2b = 0.2 * jax.random.normal(keys[7], (C2, 2 * C2), jnp.float32)
    b2b = 0.1 * jax.random.normal(keys[8], (C2,), jnp.float32)
    xb = jax.random.normal(keys[9], (B, C2, H, W), jnp.float32)

    out2 = jax.block_until_ready(star_relu_forward(xb, w1b, b1b, w2b, b2b))
    ref2 = reference_forward_bf16_matched(xb, w1b, b1b, w2b, b2b)
    err2 = float(jnp.max(jnp.abs(out2 - ref2)))
    assert jnp.allclose(out2, ref2, atol=1e-4, rtol=1e-2), f"mxu path err={err2}"

    print("KERNEL_OK")
</pallas_src>

<mosaic_0001>
module attributes {stable_mosaic.version = 11 : i64} {
  func.func @_star_relu_kernel(%arg0: i32, %arg1: i32, %arg2: memref<1x4x128xf32, #tpu.memory_space<vmem>>, %arg3: memref<16x4xf32, #tpu.memory_space<vmem>>, %arg4: memref<16x1xf32, #tpu.memory_space<vmem>>, %arg5: memref<4x8xf32, #tpu.memory_space<vmem>>, %arg6: memref<4x1xf32, #tpu.memory_space<vmem>>, %arg7: memref<1x4x128xf32, #tpu.memory_space<vmem>>) attributes {dimension_semantics = [#tpu.dimension_semantics<parallel>, #tpu.dimension_semantics<parallel>], iteration_bounds = array<i64: 2, 2>, scalar_prefetch = 0 : i64, scratch_operands = 0 : i64, tpu.core_type = #tpu.core_type<tc>, window_params = [{transform_indices = @transform_0, window_bounds = array<i64: 1, 4, 128>}, {pipeline_mode = #tpu.pipeline_mode<synchronous>, transform_indices = @transform_1, window_bounds = array<i64: 16, 4>}, {pipeline_mode = #tpu.pipeline_mode<synchronous>, transform_indices = @transform_2, window_bounds = array<i64: 16, 1>}, {pipeline_mode = #tpu.pipeline_mode<synchronous>, transform_indices = @transform_3, window_bounds = array<i64: 4, 8>}, {pipeline_mode = #tpu.pipeline_mode<synchronous>, transform_indices = @transform_4, window_bounds = array<i64: 4, 1>}, {transform_indices = @transform_5, window_bounds = array<i64: 1, 4, 128>}]} {
    %c0 = arith.constant 0 : index
    %c0_0 = arith.constant 0 : index
    %c0_1 = arith.constant 0 : index
    %0 = vector.load %arg2[%c0, %c0_0, %c0_1] : memref<1x4x128xf32, #tpu.memory_space<vmem>>, vector<1x4x128xf32>
    %1 = vector.shape_cast %0 : vector<1x4x128xf32> to vector<4x128xf32>
    %c0_2 = arith.constant 0 : index
    %c0_3 = arith.constant 0 : index
    %2 = vector.load %arg3[%c0_2, %c0_3] : memref<16x4xf32, #tpu.memory_space<vmem>>, vector<16x4xf32>
    %c0_4 = arith.constant 0 : index
    %c0_5 = arith.constant 0 : index
    %3 = vector.load %arg5[%c0_4, %c0_5] : memref<4x8xf32, #tpu.memory_space<vmem>>, vector<4x8xf32>
    %c0_6 = arith.constant 0 : index
    %c0_7 = arith.constant 0 : index
    %4 = vector.load %arg4[%c0_6, %c0_7] : memref<16x1xf32, #tpu.memory_space<vmem>>, vector<16x1xf32>
    %c0_8 = arith.constant 0 : index
    %c0_9 = arith.constant 0 : index
    %5 = vector.load %arg6[%c0_8, %c0_9] : memref<4x1xf32, #tpu.memory_space<vmem>>, vector<4x1xf32>
    %6 = vector.extract_strided_slice %2 {offsets = [0, 0], sizes = [16, 1], strides = [1, 1]} : vector<16x4xf32> to vector<16x1xf32>
    %7 = vector.extract_strided_slice %1 {offsets = [0, 0], sizes = [1, 128], strides = [1, 1]} : vector<4x128xf32> to vector<1x128xf32>
    %8 = vector.broadcast %6 : vector<16x1xf32> to vector<16x128xf32>
    %9 = vector.broadcast %7 : vector<1x128xf32> to vector<16x128xf32>
    %10 = arith.mulf %8, %9 : vector<16x128xf32>
    %cst = arith.constant 0.000000e+00 : f32
    %11 = vector.broadcast %cst : f32 to vector<16x128xf32>
    %12 = arith.addf %11, %10 : vector<16x128xf32>
    %13 = vector.extract_strided_slice %2 {offsets = [0, 1], sizes = [16, 1], strides = [1, 1]} : vector<16x4xf32> to vector<16x1xf32>
    %14 = vector.extract_strided_slice %1 {offsets = [1, 0], sizes = [1, 128], strides = [1, 1]} : vector<4x128xf32> to vector<1x128xf32>
    %15 = vector.broadcast %13 : vector<16x1xf32> to vector<16x128xf32>
    %16 = vector.broadcast %14 : vector<1x128xf32> to vector<16x128xf32>
    %17 = arith.mulf %15, %16 : vector<16x128xf32>
    %18 = arith.addf %12, %17 : vector<16x128xf32>
    %19 = vector.extract_strided_slice %2 {offsets = [0, 2], sizes = [16, 1], strides = [1, 1]} : vector<16x4xf32> to vector<16x1xf32>
    %20 = vector.extract_strided_slice %1 {offsets = [2, 0], sizes = [1, 128], strides = [1, 1]} : vector<4x128xf32> to vector<1x128xf32>
    %21 = vector.broadcast %19 : vector<16x1xf32> to vector<16x128xf32>
    %22 = vector.broadcast %20 : vector<1x128xf32> to vector<16x128xf32>
    %23 = arith.mulf %21, %22 : vector<16x128xf32>
    %24 = arith.addf %18, %23 : vector<16x128xf32>
    %25 = vector.extract_strided_slice %2 {offsets = [0, 3], sizes = [16, 1], strides = [1, 1]} : vector<16x4xf32> to vector<16x1xf32>
    %26 = vector.extract_strided_slice %1 {offsets = [3, 0], sizes = [1, 128], strides = [1, 1]} : vector<4x128xf32> to vector<1x128xf32>
    %27 = vector.broadcast %25 : vector<16x1xf32> to vector<16x128xf32>
    %28 = vector.broadcast %26 : vector<1x128xf32> to vector<16x128xf32>
    %29 = arith.mulf %27, %28 : vector<16x128xf32>
    %30 = arith.addf %24, %29 : vector<16x128xf32>
    %31 = vector.broadcast %4 : vector<16x1xf32> to vector<16x128xf32>
    %32 = arith.addf %31, %30 : vector<16x128xf32>
    %33 = vector.extract_strided_slice %32 {offsets = [0, 0], sizes = [8, 128], strides = [1, 1]} : vector<16x128xf32> to vector<8x128xf32>
    %34 = vector.extract_strided_slice %32 {offsets = [8, 0], sizes = [8, 128], strides = [1, 1]} : vector<16x128xf32> to vector<8x128xf32>
    %35 = arith.mulf %33, %34 : vector<8x128xf32>
    %36 = vector.extract_strided_slice %3 {offsets = [0, 0], sizes = [4, 1], strides = [1, 1]} : vector<4x8xf32> to vector<4x1xf32>
    %37 = vector.extract_strided_slice %35 {offsets = [0, 0], sizes = [1, 128], strides = [1, 1]} : vector<8x128xf32> to vector<1x128xf32>
    %38 = vector.broadcast %36 : vector<4x1xf32> to vector<4x128xf32>
    %39 = vector.broadcast %37 : vector<1x128xf32> to vector<4x128xf32>
    %40 = arith.mulf %38, %39 : vector<4x128xf32>
    %cst_10 = arith.constant 0.000000e+00 : f32
    %41 = vector.broadcast %cst_10 : f32 to vector<4x128xf32>
    %42 = arith.addf %41, %40 : vector<4x128xf32>
    %43 = vector.extract_strided_slice %3 {offsets = [0, 1], sizes = [4, 1], strides = [1, 1]} : vector<4x8xf32> to vector<4x1xf32>
    %44 = vector.extract_strided_slice %35 {offsets = [1, 0], sizes = [1, 128], strides = [1, 1]} : vector<8x128xf32> to vector<1x128xf32>
    %45 = vector.broadcast %43 : vector<4x1xf32> to vector<4x128xf32>
    %46 = vector.broadcast %44 : vector<1x128xf32> to vector<4x128xf32>
    %47 = arith.mulf %45, %46 : vector<4x128xf32>
    %48 = arith.addf %42, %47 : vector<4x128xf32>
    %49 = vector.extract_strided_slice %3 {offsets = [0, 2], sizes = [4, 1], strides = [1, 1]} : vector<4x8xf32> to vector<4x1xf32>
    %50 = vector.extract_strided_slice %35 {offsets = [2, 0], sizes = [1, 128], strides = [1, 1]} : vector<8x128xf32> to vector<1x128xf32>
    %51 = vector.broadcast %49 : vector<4x1xf32> to vector<4x128xf32>
    %52 = vector.broadcast %50 : vector<1x128xf32> to vector<4x128xf32>
    %53 = arith.mulf %51, %52 : vector<4x128xf32>
    %54 = arith.addf %48, %53 : vector<4x128xf32>
    %55 = vector.extract_strided_slice %3 {offsets = [0, 3], sizes = [4, 1], strides = [1, 1]} : vector<4x8xf32> to vector<4x1xf32>
    %56 = vector.extract_strided_slice %35 {offsets = [3, 0], sizes = [1, 128], strides = [1, 1]} : vector<8x128xf32> to vector<1x128xf32>
    %57 = vector.broadcast %55 : vector<4x1xf32> to vector<4x128xf32>
    %58 = vector.broadcast %56 : vector<1x128xf32> to vector<4x128xf32>
    %59 = arith.mulf %57, %58 : vector<4x128xf32>
    %60 = arith.addf %54, %59 : vector<4x128xf32>
    %61 = vector.extract_strided_slice %3 {offsets = [0, 4], sizes = [4, 1], strides = [1, 1]} : vector<4x8xf32> to vector<4x1xf32>
    %62 = vector.extract_strided_slice %35 {offsets = [4, 0], sizes = [1, 128], strides = [1, 1]} : vector<8x128xf32> to vector<1x128xf32>
    %63 = vector.broadcast %61 : vector<4x1xf32> to vector<4x128xf32>
    %64 = vector.broadcast %62 : vector<1x128xf32> to vector<4x128xf32>
    %65 = arith.mulf %63, %64 : vector<4x128xf32>
    %66 = arith.addf %60, %65 : vector<4x128xf32>
    %67 = vector.extract_strided_slice %3 {offsets = [0, 5], sizes = [4, 1], strides = [1, 1]} : vector<4x8xf32> to vector<4x1xf32>
    %68 = vector.extract_strided_slice %35 {offsets = [5, 0], sizes = [1, 128], strides = [1, 1]} : vector<8x128xf32> to vector<1x128xf32>
    %69 = vector.broadcast %67 : vector<4x1xf32> to vector<4x128xf32>
    %70 = vector.broadcast %68 : vector<1x128xf32> to vector<4x128xf32>
    %71 = arith.mulf %69, %70 : vector<4x128xf32>
    %72 = arith.addf %66, %71 : vector<4x128xf32>
    %73 = vector.extract_strided_slice %3 {offsets = [0, 6], sizes = [4, 1], strides = [1, 1]} : vector<4x8xf32> to vector<4x1xf32>
    %74 = vector.extract_strided_slice %35 {offsets = [6, 0], sizes = [1, 128], strides = [1, 1]} : vector<8x128xf32> to vector<1x128xf32>
    %75 = vector.broadcast %73 : vector<4x1xf32> to vector<4x128xf32>
    %76 = vector.broadcast %74 : vector<1x128xf32> to vector<4x128xf32>
    %77 = arith.mulf %75, %76 : vector<4x128xf32>
    %78 = arith.addf %72, %77 : vector<4x128xf32>
    %79 = vector.extract_strided_slice %3 {offsets = [0, 7], sizes = [4, 1], strides = [1, 1]} : vector<4x8xf32> to vector<4x1xf32>
    %80 = vector.extract_strided_slice %35 {offsets = [7, 0], sizes = [1, 128], strides = [1, 1]} : vector<8x128xf32> to vector<1x128xf32>
    %81 = vector.broadcast %79 : vector<4x1xf32> to vector<4x128xf32>
    %82 = vector.broadcast %80 : vector<1x128xf32> to vector<4x128xf32>
    %83 = arith.mulf %81, %82 : vector<4x128xf32>
    %84 = arith.addf %78, %83 : vector<4x128xf32>
    %85 = vector.broadcast %5 : vector<4x1xf32> to vector<4x128xf32>
    %86 = arith.addf %85, %84 : vector<4x128xf32>
    %c0_11 = arith.constant 0 : index
    %c0_12 = arith.constant 0 : index
    %c0_13 = arith.constant 0 : index
    %87 = vector.load %arg7[%c0_11, %c0_12, %c0_13] : memref<1x4x128xf32, #tpu.memory_space<vmem>>, vector<1x4x128xf32>
    %88 = vector.shape_cast %87 : vector<1x4x128xf32> to vector<4x128xf32>
    %89 = vector.shape_cast %86 : vector<4x128xf32> to vector<1x4x128xf32>
    tpu.vector_store %arg7[%c0_11, %c0_12, %c0_13], %89 {strides = array<i32>} : memref<1x4x128xf32, #tpu.memory_space<vmem>>, vector<1x4x128xf32>,
    return
  }
  func.func @transform_0(%arg0: i32, %arg1: i32) -> (i32, i32, i32) {
    %c0_i32 = arith.constant 0 : i32
    %c0_i32_0 = arith.constant 0 : i32
    return %arg0, %c0_i32, %arg1 : i32, i32, i32
  }
  func.func @transform_1(%arg0: i32, %arg1: i32) -> (i32, i32) {
    %c0_i32 = arith.constant 0 : i32
    %c0_i32_0 = arith.constant 0 : i32
    %c0_i32_1 = arith.constant 0 : i32
    return %c0_i32, %c0_i32_0 : i32, i32
  }
  func.func @transform_2(%arg0: i32, %arg1: i32) -> (i32, i32) {
    %c0_i32 = arith.constant 0 : i32
    %c0_i32_0 = arith.constant 0 : i32
    %c0_i32_1 = arith.constant 0 : i32
    return %c0_i32, %c0_i32_0 : i32, i32
  }
  func.func @transform_3(%arg0: i32, %arg1: i32) -> (i32, i32) {
    %c0_i32 = arith.constant 0 : i32
    %c0_i32_0 = arith.constant 0 : i32
    %c0_i32_1 = arith.constant 0 : i32
    return %c0_i32, %c0_i32_0 : i32, i32
  }
  func.func @transform_4(%arg0: i32, %arg1: i32) -> (i32, i32) {
    %c0_i32 = arith.constant 0 : i32
    %c0_i32_0 = arith.constant 0 : i32
    %c0_i32_1 = arith.constant 0 : i32
    return %c0_i32, %c0_i32_0 : i32, i32
  }
  func.func @transform_5(%arg0: i32, %arg1: i32) -> (i32, i32, i32) {
    %c0_i32 = arith.constant 0 : i32
    %c0_i32_0 = arith.constant 0 : i32
    return %arg0, %c0_i32, %arg1 : i32, i32, i32
  }
}

</mosaic_0001>

<bundles_post_ra>
// kernel: tpu_custom_call.1
= control target key start
LH: loop header
LB: loop body
LE: loop exit
PB: predicated region body
PF: predicated region fallthrough
CT: control target
= control target key end

     0   :  { %10 = vsyncpa [#allocation3], 0  ;;  %s864_s0 = inlined_call_operand.vmem [shape: f32[2,4,256], index: 0, kind: input, shape index: {}]   ;;  %s865_s1 = inlined_call_operand.vmem [shape: f32[16,4], index: 1, kind: input, shape index: {}]   ;;  %s866_s2 = inlined_call_operand.vmem [shape: f32[16,1], index: 2, kind: input, shape index: {}]   ;;  %s867_s3 = inlined_call_operand.vmem [shape: f32[4,8], index: 3, kind: input, shape index: {}]   ;;  %s868_s4 = inlined_call_operand.vmem [shape: f32[4,1], index: 4, kind: input, shape index: {}]   ;;  %s869_s5 = inlined_call_operand.hbm [shape: f32[2,4,256], index: 5, kind: output, shape index: {}]  }
   0x1   :  { %12 = vsyncpa [#allocation3 + $0x1], 0  ;;  %s724_s18 = smov 0   ;;  %s726_s19 = smov 0  }
   0x2   :  { %s728_s20 = smov 0   ;;  %s730_s21 = smov 0  }
   0x3   :  { %s732_s22 = smov 0   ;;  %s734_s23 = smov 0  }
   0x4   :  { %s736_s24 = smov 0   ;;  %s738_s25 = smov 0  }
   0x5 LB: > { %s482_s26 = sadd.s32 4294967295, %s684_s25   ;;  %s483_s27 = sadd.s32 4294967294, %s684_s25   ;;  %s684_s25 = sphi %s738_s25, %s18_s25   ;;  %s680_s24 = sphi %s736_s24, %s878_s24   ;;  %s676_s23 = sphi %s734_s23, %s877_s23   ;;  %s672_s22 = sphi %s732_s22, %s876_s22   ;;  %s668_s21 = sphi %s730_s21, %s875_s21   ;;  %s664_s20 = sphi %s728_s20, %s874_s20   ;;  %s660_s19 = sphi %s726_s19, %s873_s19   ;;  %s656_s18 = sphi %s724_s18, %s872_s18  }
   0x6   : > { %s27_s28 = sadd.s32 1, %s676_s23  ;;  %s30_s29 = sadd.s32 1, %s680_s24 }
   0x7   : > { %p28_p0 = scmp.ge.s32.totalorder %s27_s28, 2  ;;  %p161_p1 = scmp.ne.s32.totalorder %s664_s20, %s660_s19 }
   0x8   : > { %p162_p2 = scmp.eq.s32.totalorder %s482_s26, 3  ;;  %p167_p5 = scmp.ne.s32.totalorder %s660_s19, %s656_s18 }
   0x9   : > { %s880_s28 = smov (%p28_p0, %s27_s28), 0  ;;  %s882_s29 = smov (!%p28_p0, %s30_s29), %s680_s24 }
   0xa   : > { %s147_s30 = ssub.s32 %s676_s23, %s880_s28  ;;  %p775_p3 = por %p162_p2, %p161_p1 }
   0xb   : > { %p32_p4 = scmp.ge.s32.totalorder %s882_s29, 2  ;;  %p168_p6 = scmp.eq.s32.totalorder %s483_s27, 3 }
   0xc   : > { %p486_p7 = scmp.ge.s32.totalorder %s684_s25, 1  ;;  %p209_p9 = scmp.lt.s32.totalorder %s684_s25, 5 }
   0xd   : > { %s884_s29 = smov (%p32_p4, %s882_s29), 0  ;;  %p784_p8 = por %p168_p6, %p167_p5 }
   0xe   : > { %s146_s8 = ssub.s32 %s680_s24, %s884_s29  ;;  %s151_s9 = sadd.s32 1, %s664_s20 }
   0xf   : > { %s148_s10 = sor.u32 %s147_s30, %s146_s8  ;;  %p210_p10 = pnand %p486_p7, %p209_p9 }
  0x10   : > { %p149_p11 = scmp.eq.s32.totalorder %s148_s10, 0  ;;  %p240_p12 = scmp.lt.s32.totalorder (!%p210_p10), %s672_s22, 1 }
  0x11   : > { %213 = sbr.rel (%p210_p10) target bundleno = 201 (0xc9), region = 40  ;;  %p242_p13 = scmp.lt.s32.totalorder (!%p210_p10), %s668_s21, 1 }
  0x12   : > { %s793_s11 = scalar_select %p149_p11, %s664_s20, %s151_s9  }
  0x13   : > { %s491_s30 = sshll.u32 (!%p210_p10), %s672_s22, 1  ;;  %s237_s8 = sand.u32 (!%p210_p10), 1, %s660_s19  }
  0x14   : > { %s397_s9 = sadd.s32 (!%p210_p10), %s668_s21, %s491_s30  ;;  %s487_s10 = sshll.u32 (!%p210_p10), %s237_s8, 2 }
  0x15   : > { %s387_s17 = scalar_lea.sflag (!%p210_p10), [#allocation3], %s237_s8 }
  0x16   : > { %v249_v0 = vld [vmem:[%s865_s1] sm:$0xff]  ;;  %v686_v1 = vmov 1   ;;  %v687_v2 = vmov 0   ;;  %v688_v3 = vmov 2   ;;  %v250_v4 = vld [vmem:[%s865_s1 + $0x8] sm:$0xff]  ;;  %v689_v5 = vmov 3  }
  0x17   : > { %575 = vset.pattern.permute.xlu1 %v686_v1  ;;  %574 = vset.pattern.permute.xlu0 %v687_v2  ;;  %v252_v6 = vld [vmem:[%s866_s2] sm:$0xff]  ;;  %v253_v7 = vld [vmem:[%s866_s2 + $0x8] sm:$0xff]  ;;  %v690_v9 = vmov 6   ;;  %v691_v10 = vmov 4   ;;  %v692_v11 = vmov 5   ;;  %v693_v12 = vmov 7  }
  0x18   : > { %271 = vperm.xlu1 %575, %v249_v0   ;;  %257 = vperm.xlu0 %574, %v249_v0   ;;  %v251_v8 = vld [vmem:[%s867_s3] sm:$0xf]  ;;  %s241_s12 = scalar_select %p240_p12, %s672_s22, 1 }
  0x19   : > { %576 = vset.pattern.permute.xlu2 %v688_v3  ;;  %v254_v13 = vld [vmem:[%s868_s4] sm:$0xf]  ;;  %s243_s13 = scalar_select %p242_p13, %s668_s21, 1 }
  0x1a   : > { %284 = vperm.xlu2 %576, %v249_v0   ;;  %s488_s14 = sshll.u32 %s241_s12, 1  ;;  %s492_s12 = sshll.u32 %s397_s9, 2 }
  0x1b   : > { %s245_s15 = sadd.s32 %s488_s14, %s243_s13  ;;  %s399_s22 = scalar_lea.hbm %s869_s5, %s492_s12 }
  0x1c   : > { %s489_s16 = sshll.u32 %s245_s15, 2  ;;  %s239_s15 = scalar_lea.vmem [#allocation2], %s487_s10 }
  0x1d   : > { %s247_s27 = scalar_lea.vmem %s864_s0, %s489_s16  ;;  %s401_s21 = sshll.u32 %s239_s15, 4  ;;  %s402_s21 = int_to_ptr.vmem [resolvable:$true] %s401_s21 }
  0x1e   : > { %v248_v18 = vld [vmem:[%s247_s27] sm:$0xf]  ;;  %s403_s16 = sshll.u32 %s399_s22, 4  ;;  %s610_s12 = scalar_lea.hbm %s869_s5, 16  ;;  %s404_s16 = int_to_ptr.hbm [resolvable:$true] %s403_s16 }
  0x1f   : > { %v278_v21 = vperm.slane %v248_v18, 1  ;;  %v265_v22 = vperm.slane %v248_v18, 0  ;;  %v291_v23 = vperm.slane %v248_v18, 2  ;;  %v304_v29 = vperm.slane %v248_v18, 3  ;;  %s604_s26 = sshra.s32 %s404_s16, 4  ;;  %s605_s26 = int_to_ptr.hbm [resolvable:$true] %s604_s26 }
  0x20   : > { %275 = vperm.xlu1 %575, %v250_v4   ;;  %262 = vperm.xlu0 %574, %v250_v4   ;;  %s606_s27 = scalar_lea.hbm %s605_s26, 4  ;;  %p611_p4 = scmp.lt.s32.totalorder %s605_s26, %s869_s5 }
  0x21   : > { %p607_p0 = scmp.ne.s32.totalorder %s605_s26, %s606_s27  ;;  %p612_p5 = scmp.lt.s32.totalorder %s610_s12, %s606_s27 }
  0x22   : > { %288 = vperm.xlu2 %576, %v250_v4  }
  0x23   : > { %p608_p1 = pnand %p607_p0, %p775_p3  ;;  %p613_p6 = por %p612_p5, %p611_p4 }
  0x25   : > { %p609_p2 = pneg %p608_p1 }
  0x27   : > { %p614_p7 = pnand %p613_p6, %p609_p2 }
  0x28   : > { %578 = vset.pattern.permute.xlu1 %v689_v5  ;;  %577 = vset.pattern.permute.xlu0 %v689_v5 }
  0x29   : > { %301 = vperm.xlu1 %578, %v250_v4   ;;  %297 = vperm.xlu0 %577, %v249_v0  }
  0x2a   : > { %579 = vset.pattern.permute.xlu2 %v687_v2 }
  0x2b   : > { %311 = vperm.xlu2 %579, %v252_v6  }
  0x31   : > { %580 = vset.pattern.permute.xlu1 %v687_v2  ;;  %581 = vset.pattern.permute.xlu0 %v686_v1 }
  0x32   : > { %316 = vperm.xlu1 %580, %v253_v7   ;;  %331 = vperm.xlu0 %581, %v251_v8  }
  0x33   : > { %324 = vperm.xlu2 %579, %v251_v8  }
  0x3a   : > { %582 = vset.pattern.permute.xlu1 %v688_v3  ;;  %586 = vset.pattern.permute.xlu0 %v690_v9 }
  0x3b   : > { %338 = vperm.xlu1 %582, %v251_v8   ;;  %366 = vperm.xlu0 %586, %v251_v8  }
  0x3c   : > { %583 = vset.pattern.permute.xlu2 %v689_v5 }
  0x3d   : > { %345 = vperm.xlu2 %583, %v251_v8  }
  0x43   : > { %584 = vset.pattern.permute.xlu1 %v691_v10  ;;  %589 = vset.pattern.permute.xlu0 %v687_v2 }
  0x44   : > { %352 = vperm.xlu1 %584, %v251_v8  }
  0x45   : > { %585 = vset.pattern.permute.xlu2 %v692_v11 }
  0x46   : > { %359 = vperm.xlu2 %585, %v251_v8  }
  0x4c   : > { %587 = vset.pattern.permute.xlu1 %v693_v12 }
  0x4d   : > { %373 = vperm.xlu1 %587, %v251_v8  }
  0x4e   : > { %588 = vset.pattern.permute.xlu2 %v687_v2 }
  0x4f   : > { %381 = vperm.xlu2 %588, %v254_v13  }
  0x74   : > { %v285_v14 = vpop.permute.xlu2 %284 }
  0x75   : > { %v292_v30 = vmul.f32 %v291_v23, %v285_v14 }
  0x7c   : > { %v289_v17 = vpop.permute.xlu2 %288 }
  0x7d   : > { %v293_v36 = vmul.f32 %v291_v23, %v289_v17 }
  0x85   : > { %v312_v26 = vpop.permute.xlu2 %311 }
  0x8a   : > { %v272_v15 = vpop.permute.xlu1 %271  ;;  %v258_v16 = vpop.permute.xlu0 %257 }
  0x8b   : > { %v279_v24 = vmul.f32 %v278_v21, %v272_v15  ;;  %v266_v25 = vmul.f32 %v265_v22, %v258_v16 }
  0x8d   : > { %v281_v31 = vadd.f32 %v279_v24, %v266_v25  ;;  %v325_v41 = vpop.permute.xlu2 %324 }
  0x8f   : > { %v294_v38 = vadd.f32 %v292_v30, %v281_v31 }
  0x92   : > { %v276_v19 = vpop.permute.xlu1 %275  ;;  %v263_v20 = vpop.permute.xlu0 %262 }
  0x93   : > { %v280_v27 = vmul.f32 %v278_v21, %v276_v19  ;;  %v267_v28 = vmul.f32 %v265_v22, %v263_v20 }
  0x95   : > { %v282_v34 = vadd.f32 %v280_v27, %v267_v28 }
  0x97   : > { %v295_v40 = vadd.f32 %v293_v36, %v282_v34  ;;  %v346_v52 = vpop.permute.xlu2 %345 }
  0x9b   : > { %v302_v32 = vpop.permute.xlu1 %301  ;;  %v298_v33 = vpop.permute.xlu0 %297 }
  0x9c   : > { %v305_v35 = vmul.f32 %v304_v29, %v298_v33  ;;  %v306_v37 = vmul.f32 %v304_v29, %v302_v32 }
  0x9e   : > { %v307_v39 = vadd.f32 %v305_v35, %v294_v38  ;;  %v308_v42 = vadd.f32 %v306_v37, %v295_v40 }
  0xa0   : > { %v319_v44 = vadd.f32 %v312_v26, %v307_v39  ;;  %v360_v63 = vpop.permute.xlu2 %359 }
  0xa4   : > { %v317_v43 = vpop.permute.xlu1 %316  ;;  %v332_v49 = vpop.permute.xlu0 %331 }
  0xa5   : > { %v320_v45 = vadd.f32 %v317_v43, %v308_v42 }
  0xa7   : > { %v321_v46 = vmul.f32 %v320_v45, %v319_v44 }
  0xa9   : > { %v327_v47 = vperm.slane %v321_v46, 0  ;;  %v334_v48 = vperm.slane %v321_v46, 1  ;;  %v341_v54 = vperm.slane %v321_v46, 2  ;;  %v348_v57 = vperm.slane %v321_v46, 3  ;;  %v382_v12 = vpop.permute.xlu2 %381 }
  0xaa   : > { %v355_v60 = vperm.slane %v321_v46, 4  ;;  %v362_v61 = vperm.slane %v321_v46, 5  ;;  %v369_v5 = vperm.slane %v321_v46, 6  ;;  %v376_v8 = vperm.slane %v321_v46, 7 }
  0xab   : > { %v328_v50 = vmul.f32 %v327_v47, %v325_v41  ;;  %v335_v51 = vmul.f32 %v334_v48, %v332_v49  ;;  %v349_v59 = vmul.f32 %v348_v57, %v346_v52 }
  0xac   : > { %v363_v3 = vmul.f32 %v362_v61, %v360_v63 }
  0xad   : > { %v339_v53 = vpop.permute.xlu1 %338  ;;  %v336_v55 = vadd.f32 %v335_v51, %v328_v50  ;;  %v367_v4 = vpop.permute.xlu0 %366 }
  0xae   : > { %v342_v56 = vmul.f32 %v341_v54, %v339_v53  ;;  %v370_v7 = vmul.f32 %v369_v5, %v367_v4 }
  0xb0   : > { %v343_v58 = vadd.f32 %v342_v56, %v336_v55 }
  0xb2   : > { %v350_v0 = vadd.f32 %v349_v59, %v343_v58 }
  0xb6   : > { %v353_v62 = vpop.permute.xlu1 %352 }
  0xb7   : > { %v356_v1 = vmul.f32 %v355_v60, %v353_v62 }
  0xb9   : > { %v357_v2 = vadd.f32 %v356_v1, %v350_v0 }
  0xbb   : > { %v364_v6 = vadd.f32 %v363_v3, %v357_v2 }
  0xbd   : > { %v371_v11 = vadd.f32 %v370_v7, %v364_v6 }
  0xbf   : > { %v374_v9 = vpop.permute.xlu1 %373 }
  0xc0   : > { %v377_v10 = vmul.f32 %v376_v8, %v374_v9 }
  0xc2   : > { %v378_v13 = vadd.f32 %v377_v10, %v371_v11 }
  0xc4   : > { %v384_v14 = vadd.f32 %v382_v12, %v378_v13 }
  0xc6   : > { %385 = vst [vmem:[%s239_s15] sm:$0xf] %v384_v14 }
  0xc7   : > { %617 = shalt.err (!%p614_p7)
}
  0xc8   : > { %495 = dma.vmem_to_hbm [thread:$0]  (%p775_p3), %s402_s21, 64, %s404_s16, %s387_s17  }
  0xc9 PF: > { %p501_p9 = scmp.ge.s32.totalorder %s684_s25, 2  ;;  %s415_s8 = sand.u32 1, %s656_s18  }
  0xca   : > { %s416_s14 = scalar_lea.sflag [#allocation3], %s415_s8 }
  0xcb   : > { %p498_p10 = pnand %p501_p9, %p784_p8 }
  0xcd   : > { %p499_p11 = pneg %p498_p10 }
  0xcf   : > { %651 = dma.done.wait (%p499_p11), %s416_s14, 64  }
  0xd0   : > { %653 = vsyncadd (%p499_p11), %s416_s14, 4294967232  ;;  %s18_s25 = sadd.s32 1, %s684_s25   ;;  %s872_s18 = smov %s660_s19 }
  0xd1   : > { %p15_p12 = scmp.ge.s32.totalorder %s18_s25, 6   ;;  %s873_s19 = smov %s664_s20 }
  0xd2   : > { %s874_s20 = smov %s793_s11  ;;  %s875_s21 = smov %s676_s23 }
  0xd3   : > { %s876_s22 = smov %s680_s24  ;;  %s877_s23 = smov %s880_s28 }
  0xd4   : > { %s878_s24 = smov %s884_s29  ;;  %17 = sbr.rel (!%p15_p12) target bundleno = 5 (0x5), region = 75 }
  0xd9   :  { %422 = vsyncpa [#allocation3], 1 }
  0xda   :  { %424 = vsyncpa [#allocation3 + $0x1], 1 }

</bundles_post_ra>
